<compile_context>
chip_gen: v6e
topology: v6e:2x2x1
jax: 0.10.0
libtpu: 0.0.40
codegen_flags: <defaults>
</compile_context>

<pallas_src>
import functools
import math

import jax
import jax.numpy as jnp
from jax import lax
from jax.experimental import pallas as pl
from jax.experimental.pallas import tpu as pltpu

_LANE = 128
_HALF_LOG_2PI = 0.5 * math.log(2.0 * math.pi)


def _nll_kernel(mean_ref, sigma_ref, target_ref, out_ref, *,
                tile_rows, rows, steps_per_partial, approx):
    j = pl.program_id(0)          # partial-sum axis ("parallel", megacore)
    i = pl.program_id(1)          # streaming / reduction axis ("arbitrary")

    @pl.when(i == 0)
    def _():
        out_ref[...] = jnp.zeros_like(out_ref)

    # Logical (unclamped) block index and how many of its rows hold real data.
    block = j * steps_per_partial + i
    valid_rows = rows - block * tile_rows

    def _compute():
        # In-kernel upcast (free VPU casts) instead of f32 copies in HBM.
        mean = mean_ref[...].astype(jnp.float32)
        sigma = sigma_ref[...].astype(jnp.float32)
        target = target_ref[...].astype(jnp.float32)
        sigma = jnp.maximum(sigma, 0.001)
        diff = target - mean
        inv = pl.reciprocal(sigma, approx=approx)   # EUP; avoids the f32 divide
        z = diff * inv
        # 0.5*log(2*pi*sigma^2) + diff^2/(2*sigma^2)
        #   = log(sigma) + 0.5*(diff/sigma)^2 + 0.5*log(2*pi)
        # The constant term is folded into the final scalar in the wrapper.
        return jnp.log(sigma) + 0.5 * (z * z)

    def _accumulate(val):
        # vreg-shaped accumulation into the resident (8,128) output block:
        # pure VPU adds per step.  The reshape splits the second-minor dim on
        # an 8-row boundary, so it is layout preserving (no VMEM copy).
        out_ref[...] += val.reshape(tile_rows // 8, 8, _LANE).sum(axis=0)

    @pl.when(valid_rows >= tile_rows)
    def _():                      # hot path: fully valid block, no masking
        _accumulate(_compute())

    @pl.when(jnp.logical_and(valid_rows > 0, valid_rows < tile_rows))
    def _():                      # at most one block per call: mask stale rows
        val = _compute()
        row = lax.broadcasted_iota(jnp.int32, val.shape, 0)
        _accumulate(jnp.where(row < valid_rows, val, 0.0))
    # valid_rows <= 0 (over-provisioned grid step): contributes nothing.


def gaussian_nll_loss(mean, sigma, target, *, max_tile_rows=None,
                      approx_reciprocal=False):
    assert mean.shape == sigma.shape == target.shape
    n = int(mean.size)
    lane = _LANE

    itemsize = jnp.dtype(mean.dtype).itemsize
    sublane = max(8, 32 // itemsize)        # native sublane tiling granularity
    if max_tile_rows is None:
        # Dtype-aware tile: ~2 MiB per input per step so the ~0.35us per-step
        # overhead is <10% of transfer time even at v7x's 3.2 TB/s HBM.
        max_tile_rows = 4096 if itemsize >= 4 else 8192

    m = mean.reshape(-1)
    s = sigma.reshape(-1)
    t = target.reshape(-1)

    rem = n % lane
    if rem:
        # Rare path (N not a multiple of 128): pad by < one lane row with
        # values whose kernel contribution is exactly zero (log(1) + 0 = 0),
        # so no in-kernel masking is needed for the padding.
        pad = lane - rem
        m = jnp.pad(m, (0, pad))
        s = jnp.pad(s, (0, pad), constant_values=1.0)
        t = jnp.pad(t, (0, pad))

    rows = m.size // lane                   # = ceil(n / 128)

    if rows <= max_tile_rows:
        num_partials = 1
        tile_rows = max(sublane, -(-rows // sublane) * sublane)
    else:
        # Two partial sums: the leading "parallel" axis lets v7x megacore shard
        # the stream across both TensorCores; inert (harmless) on v5e/v6e.
        num_partials = 2
        tile_rows = max_tile_rows

    total_blocks = -(-rows // tile_rows)
    steps_per_partial = -(-total_blocks // num_partials)
    last_block = total_blocks - 1

    m2 = m.reshape(rows, lane)   # contiguous row-major reshape: no HBM copy
    s2 = s.reshape(rows, lane)
    t2 = t.reshape(rows, lane)

    def in_index(j, i):
        # Clamp so over-provisioned grid steps never DMA past the array; the
        # kernel skips accumulating them via the *unclamped* logical block id.
        return (jnp.minimum(j * steps_per_partial + i, last_block), 0)

    in_spec = pl.BlockSpec((tile_rows, lane), in_index)
    out_spec = pl.BlockSpec((8, lane), lambda j, i: (j, 0))

    kernel = functools.partial(
        _nll_kernel, tile_rows=tile_rows, rows=rows,
        steps_per_partial=steps_per_partial, approx=approx_reciprocal)

    partials = pl.pallas_call(
        kernel,
        out_shape=jax.ShapeDtypeStruct((num_partials * 8, lane), jnp.float32),
        grid_spec=pltpu.PrefetchScalarGridSpec(
            num_scalar_prefetch=0,
            grid=(num_partials, steps_per_partial),
            in_specs=[in_spec, in_spec, in_spec],
            out_specs=out_spec,
        ),
        compiler_params=pltpu.CompilerParams(
            dimension_semantics=("parallel", "arbitrary"),
            vmem_limit_bytes=40 * 1024 * 1024,
        ),
    )(m2, s2, t2)

    # mean = sum / N, plus the folded-out 0.5*log(2*pi) constant per element.
    return jnp.sum(partials) / jnp.float32(n) + jnp.float32(_HALF_LOG_2PI)


def gaussian_nll_loss_ref(mean, sigma, target):
    sigma = jnp.maximum(sigma, 0.001)
    nll = 0.5 * jnp.log(2.0 * jnp.pi * sigma ** 2) \
        + (target - mean) ** 2 / (2.0 * sigma ** 2)
    return jnp.mean(nll)


if __name__ == "__main__":
    key = jax.random.PRNGKey(0)
    k1, k2, k3 = jax.random.split(key, 3)
    shape = (2, 4, 16, 16)  # NCHW-like, 2048 elements total
    mean = jax.random.normal(k1, shape, dtype=jnp.float32)
    sigma = jax.random.uniform(k2, shape, dtype=jnp.float32,
                               minval=0.0, maxval=2.0)
    target = jax.random.normal(k3, shape, dtype=jnp.float32)

    loss = gaussian_nll_loss(mean, sigma, target)
    jax.block_until_ready(loss)

    ref = gaussian_nll_loss_ref(mean, sigma, target)
    assert jnp.allclose(loss, ref, atol=1e-5, rtol=1e-5), (loss, ref)
    print("KERNEL_OK")
</pallas_src>

<mosaic_0001>
module attributes {stable_mosaic.version = 11 : i64} {
  func.func @_nll_kernel(%arg0: i32, %arg1: i32, %arg2: memref<16x128xf32, #tpu.memory_space<vmem>>, %arg3: memref<16x128xf32, #tpu.memory_space<vmem>>, %arg4: memref<16x128xf32, #tpu.memory_space<vmem>>, %arg5: memref<8x128xf32, #tpu.memory_space<vmem>>) attributes {dimension_semantics = [#tpu.dimension_semantics<parallel>, #tpu.dimension_semantics<arbitrary>], iteration_bounds = array<i64: 1, 1>, scalar_prefetch = 0 : i64, scratch_operands = 0 : i64, tpu.core_type = #tpu.core_type<tc>, window_params = [{transform_indices = @transform_0, window_bounds = array<i64: 16, 128>}, {transform_indices = @transform_1, window_bounds = array<i64: 16, 128>}, {transform_indices = @transform_2, window_bounds = array<i64: 16, 128>}, {transform_indices = @transform_3, window_bounds = array<i64: 8, 128>}]} {
    %c0_i32 = arith.constant 0 : i32
    %0 = arith.cmpi eq, %arg1, %c0_i32 : i32
    %1 = arith.extui %0 : i1 to i32
    %c0_i32_0 = arith.constant 0 : i32
    %2 = arith.cmpi ne, %1, %c0_i32_0 : i32
    scf.if %2 {
      %cst = arith.constant 0.000000e+00 : f32
      %15 = vector.broadcast %cst : f32 to vector<8x128xf32>
      %c0 = arith.constant 0 : index
      %c0_7 = arith.constant 0 : index
      %16 = vector.load %arg5[%c0, %c0_7] : memref<8x128xf32, #tpu.memory_space<vmem>>, vector<8x128xf32>
      tpu.vector_store %arg5[%c0, %c0_7], %15 {strides = array<i32>} : memref<8x128xf32, #tpu.memory_space<vmem>>, vector<8x128xf32>,
    } else {
    }
    %c1_i32 = arith.constant 1 : i32
    %3 = arith.muli %arg0, %c1_i32 : i32
    %4 = arith.addi %3, %arg1 : i32
    %c16_i32 = arith.constant 16 : i32
    %5 = arith.muli %4, %c16_i32 : i32
    %c16_i32_1 = arith.constant 16 : i32
    %6 = arith.subi %c16_i32_1, %5 : i32
    %c16_i32_2 = arith.constant 16 : i32
    %7 = arith.cmpi sge, %6, %c16_i32_2 : i32
    %8 = arith.extui %7 : i1 to i32
    %c0_i32_3 = arith.constant 0 : i32
    %9 = arith.cmpi ne, %8, %c0_i32_3 : i32
    scf.if %9 {
      %c0 = arith.constant 0 : index
      %c0_7 = arith.constant 0 : index
      %15 = vector.load %arg2[%c0, %c0_7] : memref<16x128xf32, #tpu.memory_space<vmem>>, vector<16x128xf32>
      %c0_8 = arith.constant 0 : index
      %c0_9 = arith.constant 0 : index
      %16 = vector.load %arg3[%c0_8, %c0_9] : memref<16x128xf32, #tpu.memory_space<vmem>>, vector<16x128xf32>
      %c0_10 = arith.constant 0 : index
      %c0_11 = arith.constant 0 : index
      %17 = vector.load %arg4[%c0_10, %c0_11] : memref<16x128xf32, #tpu.memory_space<vmem>>, vector<16x128xf32>
      %cst = arith.constant 1.000000e-03 : f32
      %18 = vector.broadcast %cst : f32 to vector<16x128xf32>
      %19 = arith.maximumf %16, %18 : vector<16x128xf32>
      %20 = arith.subf %17, %15 : vector<16x128xf32>
      %21 = tpu.reciprocal %19 : vector<16x128xf32> -> vector<16x128xf32>
      %22 = arith.mulf %20, %21 : vector<16x128xf32>
      %23 = math.log %19 : vector<16x128xf32>
      %24 = arith.mulf %22, %22 : vector<16x128xf32>
      %cst_12 = arith.constant 5.000000e-01 : f32
      %25 = vector.broadcast %cst_12 : f32 to vector<16x128xf32>
      %26 = arith.mulf %25, %24 : vector<16x128xf32>
      %27 = arith.addf %23, %26 : vector<16x128xf32>
      %c0_13 = arith.constant 0 : index
      %c0_14 = arith.constant 0 : index
      %28 = vector.load %arg5[%c0_13, %c0_14] : memref<8x128xf32, #tpu.memory_space<vmem>>, vector<8x128xf32>
      %29 = vector.shape_cast %27 : vector<16x128xf32> to vector<2x8x128xf32>
      %cst_15 = arith.constant dense<0.000000e+00> : vector<8x128xf32>
      %30 = vector.multi_reduction <add>, %29, %cst_15 [0] : vector<2x8x128xf32> to vector<8x128xf32>
      %31 = arith.addf %28, %30 : vector<8x128xf32>
      %c0_16 = arith.constant 0 : index
      %c0_17 = arith.constant 0 : index
      %32 = vector.load %arg5[%c0_16, %c0_17] : memref<8x128xf32, #tpu.memory_space<vmem>>, vector<8x128xf32>
      tpu.vector_store %arg5[%c0_16, %c0_17], %31 {strides = array<i32>} : memref<8x128xf32, #tpu.memory_space<vmem>>, vector<8x128xf32>,
    } else {
    }
    %c0_i32_4 = arith.constant 0 : i32
    %10 = arith.cmpi sgt, %6, %c0_i32_4 : i32
    %c16_i32_5 = arith.constant 16 : i32
    %11 = arith.cmpi slt, %6, %c16_i32_5 : i32
    %12 = arith.andi %10, %11 : i1
    %13 = arith.extui %12 : i1 to i32
    %c0_i32_6 = arith.constant 0 : i32
    %14 = arith.cmpi ne, %13, %c0_i32_6 : i32
    scf.if %14 {
      %c0 = arith.constant 0 : index
      %c0_7 = arith.constant 0 : index
      %15 = vector.load %arg2[%c0, %c0_7] : memref<16x128xf32, #tpu.memory_space<vmem>>, vector<16x128xf32>
      %c0_8 = arith.constant 0 : index
      %c0_9 = arith.constant 0 : index
      %16 = vector.load %arg3[%c0_8, %c0_9] : memref<16x128xf32, #tpu.memory_space<vmem>>, vector<16x128xf32>
      %c0_10 = arith.constant 0 : index
      %c0_11 = arith.constant 0 : index
      %17 = vector.load %arg4[%c0_10, %c0_11] : memref<16x128xf32, #tpu.memory_space<vmem>>, vector<16x128xf32>
      %cst = arith.constant 1.000000e-03 : f32
      %18 = vector.broadcast %cst : f32 to vector<16x128xf32>
      %19 = arith.maximumf %16, %18 : vector<16x128xf32>
      %20 = arith.subf %17, %15 : vector<16x128xf32>
      %21 = tpu.reciprocal %19 : vector<16x128xf32> -> vector<16x128xf32>
      %22 = arith.mulf %20, %21 : vector<16x128xf32>
      %23 = math.log %19 : vector<16x128xf32>
      %24 = arith.mulf %22, %22 : vector<16x128xf32>
      %cst_12 = arith.constant 5.000000e-01 : f32
      %25 = vector.broadcast %cst_12 : f32 to vector<16x128xf32>
      %26 = arith.mulf %25, %24 : vector<16x128xf32>
      %27 = arith.addf %23, %26 : vector<16x128xf32>
      %28 = tpu.iota {dimensions = array<i32: 0>} : vector<16x128xi32>
      %29 = vector.broadcast %6 : i32 to vector<16x128xi32>
      %30 = arith.cmpi slt, %28, %29 : vector<16x128xi32>
      %cst_13 = arith.constant 0.000000e+00 : f32
      %31 = vector.broadcast %cst_13 : f32 to vector<16x128xf32>
      %32 = arith.select %30, %27, %31 : vector<16x128xi1>, vector<16x128xf32>
      %c0_14 = arith.constant 0 : index
      %c0_15 = arith.constant 0 : index
      %33 = vector.load %arg5[%c0_14, %c0_15] : memref<8x128xf32, #tpu.memory_space<vmem>>, vector<8x128xf32>
      %34 = vector.shape_cast %32 : vector<16x128xf32> to vector<2x8x128xf32>
      %cst_16 = arith.constant dense<0.000000e+00> : vector<8x128xf32>
      %35 = vector.multi_reduction <add>, %34, %cst_16 [0] : vector<2x8x128xf32> to vector<8x128xf32>
      %36 = arith.addf %33, %35 : vector<8x128xf32>
      %c0_17 = arith.constant 0 : index
      %c0_18 = arith.constant 0 : index
      %37 = vector.load %arg5[%c0_17, %c0_18] : memref<8x128xf32, #tpu.memory_space<vmem>>, vector<8x128xf32>
      tpu.vector_store %arg5[%c0_17, %c0_18], %36 {strides = array<i32>} : memref<8x128xf32, #tpu.memory_space<vmem>>, vector<8x128xf32>,
    } else {
    }
    return
  }
  func.func @transform_0(%arg0: i32, %arg1: i32) -> (i32, i32) {
    %c1_i32 = arith.constant 1 : i32
    %0 = arith.muli %arg0, %c1_i32 : i32
    %1 = arith.addi %0, %arg1 : i32
    %c0_i32 = arith.constant 0 : i32
    %2 = arith.minsi %1, %c0_i32 : i32
    %c0_i32_0 = arith.constant 0 : i32
    %c0_i32_1 = arith.constant 0 : i32
    return %2, %c0_i32_0 : i32, i32
  }
  func.func @transform_1(%arg0: i32, %arg1: i32) -> (i32, i32) {
    %c1_i32 = arith.constant 1 : i32
    %0 = arith.muli %arg0, %c1_i32 : i32
    %1 = arith.addi %0, %arg1 : i32
    %c0_i32 = arith.constant 0 : i32
    %2 = arith.minsi %1, %c0_i32 : i32
    %c0_i32_0 = arith.constant 0 : i32
    %c0_i32_1 = arith.constant 0 : i32
    return %2, %c0_i32_0 : i32, i32
  }
  func.func @transform_2(%arg0: i32, %arg1: i32) -> (i32, i32) {
    %c1_i32 = arith.constant 1 : i32
    %0 = arith.muli %arg0, %c1_i32 : i32
    %1 = arith.addi %0, %arg1 : i32
    %c0_i32 = arith.constant 0 : i32
    %2 = arith.minsi %1, %c0_i32 : i32
    %c0_i32_0 = arith.constant 0 : i32
    %c0_i32_1 = arith.constant 0 : i32
    return %2, %c0_i32_0 : i32, i32
  }
  func.func @transform_3(%arg0: i32, %arg1: i32) -> (i32, i32) {
    %c0_i32 = arith.constant 0 : i32
    %c0_i32_0 = arith.constant 0 : i32
    return %arg0, %c0_i32 : i32, i32
  }
}

</mosaic_0001>

<bundles_post_ra>
// kernel: tpu_custom_call.1
= control target key start
LH: loop header
LB: loop body
LE: loop exit
PB: predicated region body
PF: predicated region fallthrough
CT: control target
= control target key end

     0   :  { %8 = vsyncpa [#allocation3], 0  ;;  %s329_s0 = inlined_call_operand.hbm [shape: f32[16,128], index: 0, kind: input, shape index: {}]   ;;  %s330_s1 = inlined_call_operand.hbm [shape: f32[16,128], index: 1, kind: input, shape index: {}]   ;;  %s331_s2 = inlined_call_operand.hbm [shape: f32[16,128], index: 2, kind: input, shape index: {}]   ;;  %s332_s3 = inlined_call_operand.hbm [shape: f32[8,128], index: 3, kind: output, shape index: {}]  }
   0x1   :  { %9 = vsyncpa [#allocation6], 0 }
   0x2   :  { %10 = vsyncpa [#allocation4], 0  ;;  %s291_s12 = smov [#allocation5]   ;;  %s292_s14 = smov [#allocation2]  }
   0x3   :  { %s40_s13 = sshll.u32 %s291_s12, 4  ;;  %s22_s15 = sshll.u32 %s292_s14, 4  ;;  %s41_s13 = int_to_ptr.vmem [resolvable:$true] %s40_s13  ;;  %s23_s15 = int_to_ptr.vmem [resolvable:$true] %s22_s15 }
   0x4   :  { %s213_s16 = scalar_lea.vmem %s41_s13, 256  ;;  %p218_p1 = scmp.lt.s32.totalorder %s41_s13, %s41_s13 }
   0x5   :  { %p214_p0 = scmp.ne.s32.totalorder %s41_s13, %s213_s16  ;;  %p219_p2 = scmp.lt.s32.totalorder %s213_s16, %s213_s16 }
   0x7   :  { %p220_p3 = por %p219_p2, %p218_p1 }
   0x9   :  { %p221_p4 = pnand %p220_p3, %p214_p0 }
   0xb   :  { %224 = shalt.err (!%p221_p4)
}
   0xc   :  { %s293_s17 = smov 128   ;;  %s294_s18 = smov 8  }
   0xd   :  { %46 = dma.hbm_to_vmem [thread:$0]  %s330_s1, 256, %s41_s13, [#allocation6], %s293_s17, %s293_s17, %s294_s18  }
   0xe   :  { %s233_s21 = scalar_lea.vmem %s23_s15, 256  ;;  %p238_p6 = scmp.lt.s32.totalorder %s23_s15, %s23_s15 }
   0xf   :  { %p234_p5 = scmp.ne.s32.totalorder %s23_s15, %s233_s21  ;;  %p239_p7 = scmp.lt.s32.totalorder %s233_s21, %s233_s21 }
  0x11   :  { %p240_p8 = por %p239_p7, %p238_p6 }
  0x13   :  { %p241_p9 = pnand %p240_p8, %p234_p5 }
  0x15   :  { %244 = shalt.err (!%p241_p9)
}
  0x16   :  { %28 = dma.hbm_to_vmem [thread:$0]  %s329_s0, 256, %s23_s15, [#allocation3], %s293_s17, %s293_s17, %s294_s18  }
  0x17   :  { %s295_s24 = smov [#allocation7]  }
  0x18   :  { %s58_s25 = sshll.u32 %s295_s24, 4  ;;  %s59_s25 = int_to_ptr.vmem [resolvable:$true] %s58_s25 }
  0x19   :  { %s253_s26 = scalar_lea.vmem %s59_s25, 256  ;;  %p258_p11 = scmp.lt.s32.totalorder %s59_s25, %s59_s25 }
  0x1a   :  { %p254_p10 = scmp.ne.s32.totalorder %s59_s25, %s253_s26  ;;  %p259_p12 = scmp.lt.s32.totalorder %s253_s26, %s253_s26 }
  0x1c   :  { %p260_p13 = por %p259_p12, %p258_p11 }
  0x1e   :  { %p261_p0 = pnand %p260_p13, %p254_p10 }
  0x20   :  { %264 = shalt.err (!%p261_p0)
}
  0x21   :  { %64 = dma.hbm_to_vmem [thread:$0]  %s331_s2, 256, %s59_s25, [#allocation6], %s293_s17, %s293_s17, %s294_s18  }
  0x22   :  { %285 = dma.done.wait [#allocation3], 256  }
  0x23   :  { %286 = vsyncadd [#allocation3], 4294967040 }
  0x24   :  { %287 = dma.done.wait [#allocation6], 512  }
  0x25   :  { %288 = vsyncadd [#allocation6], 4294966784  ;;  %v100_v0 = vld [vmem:[#allocation5] sm:$0xff]  ;;  %v101_v1 = vld [vmem:[#allocation5 + $0x8] sm:$0xff]  ;;  %s296_s0 = smov [#allocation8]  }
  0x26   :  { %v104_v2 = vmax.f32 %v100_v0, 0.001  ;;  %v105_v3 = vmax.f32 %v101_v1, 0.001  ;;  %v98_v4 = vld [vmem:[#allocation2] sm:$0xff]  ;;  %v99_v6 = vld [vmem:[#allocation2 + $0x8] sm:$0xff] }
  0x27   :  { %v102_v5 = vld [vmem:[#allocation7] sm:$0xff]  ;;  %v103_v7 = vld [vmem:[#allocation7 + $0x8] sm:$0xff]  ;;  %s174_s2 = sshll.u32 %s296_s0, 4  ;;  %s175_s2 = int_to_ptr.vmem [resolvable:$true] %s174_s2 }
  0x28   :  { %197 = vrcp.f32 %v104_v2  ;;  %v106_v8 = vsub.f32 %v102_v5, %v98_v4  ;;  %v107_v9 = vsub.f32 %v103_v7, %v99_v6  ;;  %s265_s28 = scalar_lea.vmem %s175_s2, 128  ;;  %p270_p2 = scmp.lt.s32.totalorder %s175_s2, %s175_s2 }
  0x29   :  { %199 = vrcp.f32 %v105_v3  ;;  %p266_p1 = scmp.ne.s32.totalorder %s175_s2, %s265_s28  ;;  %p271_p3 = scmp.lt.s32.totalorder %s265_s28, %s265_s28 }
  0x2a   :  { %201 = vlog2.f32 %v104_v2 }
  0x2b   :  { %203 = vlog2.f32 %v105_v3  ;;  %p272_p4 = por %p271_p3, %p270_p2 }
  0x2d   :  { %p273_p5 = pnand %p272_p4, %p266_p1 }
  0x35   :  { %v198_v10 = vpop.eup %197 }
  0x36   :  { %v200_v11 = vpop.eup %199  ;;  %v110_v12 = vmul.f32 %v198_v10, %v106_v8 }
  0x37   :  { %v202_v13 = vpop.eup %201  ;;  %v111_v14 = vmul.f32 %v200_v11, %v107_v9 }
  0x38   :  { %v204_v15 = vpop.eup %203  ;;  %v113_v16 = vmul.f32 0.6931472, %v202_v13  ;;  %v116_v17 = vmul.f32 %v110_v12, %v110_v12 }
  0x39   :  { %v115_v18 = vmul.f32 0.6931472, %v204_v15  ;;  %v117_v19 = vmul.f32 %v111_v14, %v111_v14 }
  0x3a   :  { %v118_v20 = vmul.f32 0.5, %v116_v17 }
  0x3b   :  { %v119_v21 = vmul.f32 0.5, %v117_v19 }
  0x3c   :  { %v120_v22 = vadd.f32 %v118_v20, %v113_v16 }
  0x3d   :  { %v121_v23 = vadd.f32 %v119_v21, %v115_v18 }
  0x3f   :  { %v123_v24 = vadd.f32 %v121_v23, %v120_v22 }
  0x41   :  { %125 = vst [vmem:[#allocation8] sm:$0xff] %v123_v24 }
  0x42   :  { %276 = shalt.err (!%p273_p5)
}
  0x43   :  { %177 = dma.vmem_to_hbm [thread:$0]  %s175_s2, 128, %s332_s3, [#allocation4]  }
  0x44   :  { %289 = dma.done.wait [#allocation4], 128  }
  0x45   :  { %290 = vsyncadd [#allocation4], 4294967168 }
  0x46   :  { %181 = vsyncpa [#allocation3], 1 }
  0x47   :  { %182 = vsyncpa [#allocation6], 1 }
  0x48   :  { %183 = vsyncpa [#allocation4], 1 }

</bundles_post_ra>
